<compile_context>
chip_gen: v6e
topology: v6e:2x2x1
jax: 0.10.0
libtpu: 0.0.40
codegen_flags: <defaults>
</compile_context>

<pallas_src>
import numpy as np
import jax
import jax.numpy as jnp
from jax.experimental import pallas as pl
from jax.experimental.pallas import tpu as pltpu

# ----------------------------- configuration --------------------------------
SR = 16000
N_FFT = 256
HOP = 128
N_FREQ = N_FFT // 2 + 1            # onesided STFT bins = 129
N_FREQ_PAD = 256                   # lane-aligned (zero-padded) frequency axis
N_MELS = 64
N_MELS_PAD = 128                   # lane-dense (zero-padded) mel output axis


def _round_up(x, m):
    return ((x + m - 1) // m) * m


# ------------------------ deterministic "parameters" ------------------------
def make_dft_basis(n_fft: int, n_freq: int):
    """Windowed real-DFT bases: Wr[k, f] = hann[k]*cos(2*pi*k*f/N),
       Wi[k, f] = -hann[k]*sin(2*pi*k*f/N). (numpy, float32)"""
    k = np.arange(n_fft)[:, None].astype(np.float64)
    f = np.arange(n_freq)[None, :].astype(np.float64)
    ang = 2.0 * np.pi * k * f / n_fft
    window = 0.5 - 0.5 * np.cos(2.0 * np.pi * np.arange(n_fft) / n_fft)  # Hann (periodic)
    wr = (np.cos(ang) * window[:, None]).astype(np.float32)
    wi = (-np.sin(ang) * window[:, None]).astype(np.float32)
    return wr, wi


def make_mel_filterbank(n_mels: int, n_freq: int, sr: int):
    """Triangular mel filterbank, shape (n_freq, n_mels). (numpy, float32)"""
    def hz_to_mel(f):
        return 2595.0 * np.log10(1.0 + f / 700.0)

    def mel_to_hz(m):
        return 700.0 * (10.0 ** (m / 2595.0) - 1.0)

    fft_freqs = np.linspace(0.0, sr / 2.0, n_freq)
    mel_pts = np.linspace(hz_to_mel(0.0), hz_to_mel(sr / 2.0), n_mels + 2)
    hz_pts = mel_to_hz(mel_pts)

    fb = np.zeros((n_freq, n_mels), dtype=np.float32)
    for m in range(n_mels):
        left, center, right = hz_pts[m], hz_pts[m + 1], hz_pts[m + 2]
        up = (fft_freqs - left) / max(center - left, 1e-8)
        down = (right - fft_freqs) / max(right - center, 1e-8)
        fb[:, m] = np.maximum(0.0, np.minimum(up, down)).astype(np.float32)
    return fb


def make_params():
    """Returns (wr, wi, mel_fb) unpadded (for the reference) and
       (w_fused, mel_pad) padded / fused (for the kernel)."""
    wr, wi = make_dft_basis(N_FFT, N_FREQ)
    mel_fb = make_mel_filterbank(N_MELS, N_FREQ, SR)

    # Fused, zero-padded DFT weight: (N_FFT, 2*N_FREQ_PAD) = (256, 512)
    w_fused = np.zeros((N_FFT, 2 * N_FREQ_PAD), dtype=np.float32)
    w_fused[:, :N_FREQ] = wr
    w_fused[:, N_FREQ_PAD:N_FREQ_PAD + N_FREQ] = wi

    # Zero-padded mel filterbank: (N_FREQ_PAD, N_MELS_PAD) = (256, 128)
    mel_pad = np.zeros((N_FREQ_PAD, N_MELS_PAD), dtype=np.float32)
    mel_pad[:N_FREQ, :N_MELS] = mel_fb

    return (jnp.asarray(wr), jnp.asarray(wi), jnp.asarray(mel_fb),
            jnp.asarray(w_fused), jnp.asarray(mel_pad))


# ------------------------------- Pallas kernel -------------------------------
def extract_feature_kernel(frames_ref, w_ref, mel_ref, out_ref):
    # frames_ref: (TILE_M, N_FFT)            [bf16 or f32]
    # w_ref:      (N_FFT, 2*N_FREQ_PAD)      [bf16 or f32]  = [Wr | Wi], zero-padded
    # mel_ref:    (N_FREQ_PAD, N_MELS_PAD)   [f32]
    # out_ref:    (TILE_M, N_MELS_PAD)       [f32]
    y = jnp.dot(frames_ref[...], w_ref[...],
                preferred_element_type=jnp.float32)        # (TILE_M, 512) f32 acc
    re = y[:, :N_FREQ_PAD]                                  # 128-aligned split
    im = y[:, N_FREQ_PAD:]
    spec = re * re + im * im                                # power spectrogram, f32
    mel = jnp.dot(spec, mel_ref[...],
                  preferred_element_type=jnp.float32)       # (TILE_M, 128) f32
    out_ref[...] = mel.astype(out_ref.dtype)


def extract_feature(x, w_fused, mel_pad, *, tile_m=256, use_bf16=True):
    """x: (B, T) float32 waveform -> (B, F, N_MELS) mel power spectrogram."""
    B, T = x.shape
    n_frames = (T - N_FFT) // HOP + 1

    # Glue: frame the waveform and flatten (B, F) -> one M axis.
    frame_idx = (np.arange(n_frames)[:, None] * HOP
                 + np.arange(N_FFT)[None, :])
    frames = x[:, frame_idx].reshape(B * n_frames, N_FFT)   # (M, N_FFT)
    M = B * n_frames

    # Row-tile the M axis; pad with zero rows so the grid divides evenly.
    tile_m = min(tile_m, _round_up(M, 8))
    m_pad = _round_up(M, tile_m)
    if m_pad != M:
        frames = jnp.pad(frames, ((0, m_pad - M), (0, 0)))

    cdtype = jnp.bfloat16 if use_bf16 else jnp.float32
    frames = frames.astype(cdtype)
    w = w_fused.astype(cdtype)

    grid = (m_pad // tile_m,)
    out = pl.pallas_call(
        extract_feature_kernel,
        out_shape=jax.ShapeDtypeStruct((m_pad, N_MELS_PAD), jnp.float32),
        grid_spec=pltpu.PrefetchScalarGridSpec(
            num_scalar_prefetch=0,
            grid=grid,
            in_specs=[
                pl.BlockSpec((tile_m, N_FFT), lambda i: (i, 0)),
                pl.BlockSpec((N_FFT, 2 * N_FREQ_PAD), lambda i: (0, 0)),
                pl.BlockSpec((N_FREQ_PAD, N_MELS_PAD), lambda i: (0, 0)),
            ],
            out_specs=pl.BlockSpec((tile_m, N_MELS_PAD), lambda i: (i, 0)),
        ),
        compiler_params=pltpu.CompilerParams(
            dimension_semantics=("parallel",)),
    )(frames, w, mel_pad)

    # Slice off row padding and the zero-padded mel columns, restore (B, F, M).
    return out[:M, :N_MELS].reshape(B, n_frames, N_MELS)


# ------------------------------- reference -----------------------------------
def extract_feature_ref(x, wr, wi, mel_fb, *, use_bf16=True):
    B, T = x.shape
    n_frames = (T - N_FFT) // HOP + 1
    frame_idx = (np.arange(n_frames)[:, None] * HOP
                 + np.arange(N_FFT)[None, :])
    frames = x[:, frame_idx]                                # (B, F, N_FFT)
    cdtype = jnp.bfloat16 if use_bf16 else jnp.float32
    f = frames.astype(cdtype)
    re = jnp.einsum("bfk,kn->bfn", f, wr.astype(cdtype),
                    preferred_element_type=jnp.float32)
    im = jnp.einsum("bfk,kn->bfn", f, wi.astype(cdtype),
                    preferred_element_type=jnp.float32)
    spec = re * re + im * im
    return jnp.einsum("bfn,nm->bfm", spec, mel_fb,
                      preferred_element_type=jnp.float32)


# --------------------------------- main ---------------------------------------
if __name__ == "__main__":
    key = jax.random.PRNGKey(0)
    B, T = 2, 2048
    x = jax.random.normal(key, (B, T), dtype=jnp.float32)

    wr, wi, mel_fb, w_fused, mel_pad = make_params()

    out = extract_feature(x, w_fused, mel_pad, tile_m=256, use_bf16=True)
    out = jax.block_until_ready(out)

    ref = jax.block_until_ready(
        extract_feature_ref(x, wr, wi, mel_fb, use_bf16=True))
    assert out.shape == ref.shape, (out.shape, ref.shape)
    np.testing.assert_allclose(np.asarray(out), np.asarray(ref),
                               rtol=1e-3, atol=1e-2)
    print("KERNEL_OK")
</pallas_src>

<mosaic_0001>
module attributes {stable_mosaic.version = 11 : i64} {
  func.func @extract_feature_kernel(%arg0: i32, %arg1: memref<32x256xbf16, #tpu.memory_space<vmem>>, %arg2: memref<256x512xbf16, #tpu.memory_space<vmem>>, %arg3: memref<256x128xf32, #tpu.memory_space<vmem>>, %arg4: memref<32x128xf32, #tpu.memory_space<vmem>>) attributes {dimension_semantics = [#tpu.dimension_semantics<parallel>], iteration_bounds = array<i64: 1>, scalar_prefetch = 0 : i64, scratch_operands = 0 : i64, tpu.core_type = #tpu.core_type<tc>, window_params = [{transform_indices = @transform_0, window_bounds = array<i64: 32, 256>}, {pipeline_mode = #tpu.pipeline_mode<synchronous>, transform_indices = @transform_1, window_bounds = array<i64: 256, 512>}, {pipeline_mode = #tpu.pipeline_mode<synchronous>, transform_indices = @transform_2, window_bounds = array<i64: 256, 128>}, {transform_indices = @transform_3, window_bounds = array<i64: 32, 128>}]} {
    %c0 = arith.constant 0 : index
    %c0_0 = arith.constant 0 : index
    %0 = vector.load %arg1[%c0, %c0_0] : memref<32x256xbf16, #tpu.memory_space<vmem>>, vector<32x256xbf16>
    %c0_1 = arith.constant 0 : index
    %c0_2 = arith.constant 0 : index
    %1 = vector.load %arg2[%c0_1, %c0_2] : memref<256x512xbf16, #tpu.memory_space<vmem>>, vector<256x512xbf16>
    %cst = arith.constant dense<0.000000e+00> : vector<32x512xf32>
    %2 = tpu.matmul %0, %1, %cst {dimension_numbers = #tpu.dot_dimension_numbers<[1], [0], [0], [1], [0, 0, 1, 1], [], []>} : vector<32x256xbf16>, vector<256x512xbf16>, vector<32x512xf32> -> vector<32x512xf32>
    %3 = vector.extract_strided_slice %2 {offsets = [0, 0], sizes = [32, 256], strides = [1, 1]} : vector<32x512xf32> to vector<32x256xf32>
    %4 = vector.extract_strided_slice %2 {offsets = [0, 256], sizes = [32, 256], strides = [1, 1]} : vector<32x512xf32> to vector<32x256xf32>
    %5 = arith.mulf %3, %3 : vector<32x256xf32>
    %6 = arith.mulf %4, %4 : vector<32x256xf32>
    %7 = arith.addf %5, %6 : vector<32x256xf32>
    %c0_3 = arith.constant 0 : index
    %c0_4 = arith.constant 0 : index
    %8 = vector.load %arg3[%c0_3, %c0_4] : memref<256x128xf32, #tpu.memory_space<vmem>>, vector<256x128xf32>
    %cst_5 = arith.constant dense<0.000000e+00> : vector<32x128xf32>
    %9 = tpu.matmul %7, %8, %cst_5 {dimension_numbers = #tpu.dot_dimension_numbers<[1], [0], [0], [1], [0, 0, 1, 1], [], []>} : vector<32x256xf32>, vector<256x128xf32>, vector<32x128xf32> -> vector<32x128xf32>
    %c0_6 = arith.constant 0 : index
    %c0_7 = arith.constant 0 : index
    %10 = vector.load %arg4[%c0_6, %c0_7] : memref<32x128xf32, #tpu.memory_space<vmem>>, vector<32x128xf32>
    tpu.vector_store %arg4[%c0_6, %c0_7], %9 {strides = array<i32>} : memref<32x128xf32, #tpu.memory_space<vmem>>, vector<32x128xf32>,
    return
  }
  func.func @transform_0(%arg0: i32) -> (i32, i32) {
    %c0_i32 = arith.constant 0 : i32
    %c0_i32_0 = arith.constant 0 : i32
    return %arg0, %c0_i32 : i32, i32
  }
  func.func @transform_1(%arg0: i32) -> (i32, i32) {
    %c0_i32 = arith.constant 0 : i32
    %c0_i32_0 = arith.constant 0 : i32
    %c0_i32_1 = arith.constant 0 : i32
    return %c0_i32, %c0_i32_0 : i32, i32
  }
  func.func @transform_2(%arg0: i32) -> (i32, i32) {
    %c0_i32 = arith.constant 0 : i32
    %c0_i32_0 = arith.constant 0 : i32
    %c0_i32_1 = arith.constant 0 : i32
    return %c0_i32, %c0_i32_0 : i32, i32
  }
  func.func @transform_3(%arg0: i32) -> (i32, i32) {
    %c0_i32 = arith.constant 0 : i32
    %c0_i32_0 = arith.constant 0 : i32
    return %arg0, %c0_i32 : i32, i32
  }
}

</mosaic_0001>

<bundles_post_ra>
// kernel: tpu_custom_call.1
= control target key start
LH: loop header
LB: loop body
LE: loop exit
PB: predicated region body
PF: predicated region fallthrough
CT: control target
= control target key end

     0   :  { %8 = vsyncpa [#allocation3], 0  ;;  %s1122_s0 = inlined_call_operand.hbm [shape: bf16[32,256], index: 0, kind: input, shape index: {}]   ;;  %s1123_s1 = inlined_call_operand.hbm [shape: bf16[256,512], index: 1, kind: input, shape index: {}]   ;;  %s1124_s2 = inlined_call_operand.hbm [shape: f32[256,128], index: 2, kind: input, shape index: {}]   ;;  %s1125_s3 = inlined_call_operand.hbm [shape: f32[32,128], index: 3, kind: output, shape index: {}]  }
   0x1   :  { %9 = vsyncpa [#allocation6], 0 }
   0x2   :  { %10 = vsyncpa [#allocation4], 0  ;;  %s1073_s12 = smov [#allocation5]  }
   0x3   :  { %s28_s13 = sshll.u32 %s1073_s12, 4  ;;  %s29_s13 = int_to_ptr.vmem [resolvable:$true] %s28_s13 }
   0x4   :  { %s995_s14 = scalar_lea.vmem %s29_s13, 8192  ;;  %p1000_p1 = scmp.lt.s32.totalorder %s29_s13, %s29_s13 }
   0x5   :  { %p996_p0 = scmp.ne.s32.totalorder %s29_s13, %s995_s14  ;;  %p1001_p2 = scmp.lt.s32.totalorder %s995_s14, %s995_s14 }
   0x7   :  { %p1002_p3 = por %p1001_p2, %p1000_p1 }
   0x9   :  { %p1003_p4 = pnand %p1002_p3, %p996_p0 }
   0xb   :  { %1006 = shalt.err (!%p1003_p4)
}
   0xc   :  { %s1074_s15 = smov 256   ;;  %s1075_s16 = smov 16  }
   0xd   :  { %34 = dma.hbm_to_vmem [thread:$0]  %s1123_s1, 8192, %s29_s13, [#allocation6], %s1074_s15, %s1074_s15, %s1075_s16  }
   0xe   :  { %s1076_s19 = smov [#allocation2]  }
   0xf   :  { %s16_s20 = sshll.u32 %s1076_s19, 4  ;;  %s17_s20 = int_to_ptr.vmem [resolvable:$true] %s16_s20 }
  0x10   :  { %s1015_s21 = scalar_lea.vmem %s17_s20, 512  ;;  %p1020_p6 = scmp.lt.s32.totalorder %s17_s20, %s17_s20 }
  0x11   :  { %p1016_p5 = scmp.ne.s32.totalorder %s17_s20, %s1015_s21  ;;  %p1021_p7 = scmp.lt.s32.totalorder %s1015_s21, %s1015_s21 }
  0x13   :  { %p1022_p8 = por %p1021_p7, %p1020_p6 }
  0x15   :  { %p1023_p9 = pnand %p1022_p8, %p1016_p5 }
  0x17   :  { %1026 = shalt.err (!%p1023_p9)
}
  0x18   :  { %s1077_s22 = smov 128   ;;  %s1078_s23 = smov 8  }
  0x19   :  { %22 = dma.hbm_to_vmem [thread:$0]  %s1122_s0, 512, %s17_s20, [#allocation3], %s1077_s22, %s1077_s22, %s1078_s23  }
  0x1a   :  { %s1079_s1 = smov [#allocation7]  }
  0x1b   :  { %s40_s26 = sshll.u32 %s1079_s1, 4  ;;  %s41_s26 = int_to_ptr.vmem [resolvable:$true] %s40_s26 }
  0x1c   :  { %s1035_s27 = scalar_lea.vmem %s41_s26, 4096  ;;  %p1040_p11 = scmp.lt.s32.totalorder %s41_s26, %s41_s26 }
  0x1d   :  { %p1036_p10 = scmp.ne.s32.totalorder %s41_s26, %s1035_s27  ;;  %p1041_p12 = scmp.lt.s32.totalorder %s1035_s27, %s1035_s27 }
  0x1f   :  { %p1042_p13 = por %p1041_p12, %p1040_p11 }
  0x21   :  { %p1043_p0 = pnand %p1042_p13, %p1036_p10 }
  0x23   :  { %1046 = shalt.err (!%p1043_p0)
}
  0x24   :  { %46 = dma.hbm_to_vmem [thread:$0]  %s1124_s2, 4096, %s41_s26, [#allocation6], %s1077_s22, %s1077_s22, %s1078_s23  }
  0x25   :  { %1067 = dma.done.wait [#allocation3], 512  }
  0x26   :  { %1068 = vsyncadd [#allocation3], 4294966784 }
  0x27   :  { %1069 = dma.done.wait [#allocation6], 12288  }
  0x28   :  { %1070 = vsyncadd [#allocation6], 4294955008  ;;  %v885_v0 = vld [vmem:[#allocation5 + $0xe4] ss:$16 sps:$4 sm:$0xff]   ;;  %v887_v1 = vld [vmem:[#allocation5 + $0xec] ss:$16 sps:$4 sm:$0xff]  }
  0x29   :  { %464 = vmatprep.subr.bf16.mxu0 %v885_v0  ;;  %v889_v2 = vld [vmem:[#allocation5 + $0xe0] ss:$16 sps:$4 sm:$0xff]   ;;  %v890_v3 = vld [vmem:[#allocation5 + $0xe8] ss:$16 sps:$4 sm:$0xff]   ;;  %517 = vmatprep.subr.bf16.mxu1 %v887_v1  ;;  %v891_v4 = vld [vmem:[#allocation5 + $0xc4] ss:$16 sps:$4 sm:$0xff]  }
  0x2a   :  { %465 = vmatpush1.bf16.msra.mxu0 %v889_v2  ;;  %518 = vmatpush1.bf16.msra.mxu1 %v890_v3  ;;  %v893_v5 = vld [vmem:[#allocation5 + $0xcc] ss:$16 sps:$4 sm:$0xff]   ;;  %v895_v6 = vld [vmem:[#allocation5 + $0xc0] ss:$16 sps:$4 sm:$0xff]   ;;  %v896_v7 = vld [vmem:[#allocation5 + $0xc8] ss:$16 sps:$4 sm:$0xff]  }
  0x2b   :  { %466 = vmatprep.subr.bf16.mxu0 %v891_v4  ;;  %519 = vmatprep.subr.bf16.mxu1 %v893_v5  ;;  %v897_v8 = vld [vmem:[#allocation5 + $0xa4] ss:$16 sps:$4 sm:$0xff]   ;;  %v899_v9 = vld [vmem:[#allocation5 + $0xac] ss:$16 sps:$4 sm:$0xff]   ;;  %v901_v10 = vld [vmem:[#allocation5 + $0xa0] ss:$16 sps:$4 sm:$0xff]  }
  0x2c   :  { %v902_v11 = vld [vmem:[#allocation5 + $0xa8] ss:$16 sps:$4 sm:$0xff]   ;;  %v903_v12 = vld [vmem:[#allocation5 + $0x84] ss:$16 sps:$4 sm:$0xff]   ;;  %v905_v13 = vld [vmem:[#allocation5 + $0x8c] ss:$16 sps:$4 sm:$0xff]  }
  0x2d   :  { %v907_v14 = vld [vmem:[#allocation5 + $0x80] ss:$16 sps:$4 sm:$0xff]   ;;  %v908_v15 = vld [vmem:[#allocation5 + $0x88] ss:$16 sps:$4 sm:$0xff]   ;;  %v909_v16 = vld [vmem:[#allocation5 + $0x64] ss:$16 sps:$4 sm:$0xff]  }
  0x2e   :  { %467 = vmatpush1.bf16.msra.mxu0 %v895_v6  ;;  %520 = vmatpush1.bf16.msra.mxu1 %v896_v7  ;;  %v911_v17 = vld [vmem:[#allocation5 + $0x6c] ss:$16 sps:$4 sm:$0xff]   ;;  %v913_v18 = vld [vmem:[#allocation5 + $0x60] ss:$16 sps:$4 sm:$0xff]   ;;  %v914_v19 = vld [vmem:[#allocation5 + $0x68] ss:$16 sps:$4 sm:$0xff]  }
  0x2f   :  { %468 = vmatprep.subr.bf16.mxu0 %v897_v8  ;;  %521 = vmatprep.subr.bf16.mxu1 %v899_v9  ;;  %v915_v20 = vld [vmem:[#allocation5 + $0x44] ss:$16 sps:$4 sm:$0xff]   ;;  %v917_v21 = vld [vmem:[#allocation5 + $0x4c] ss:$16 sps:$4 sm:$0xff]   ;;  %v919_v22 = vld [vmem:[#allocation5 + $0x40] ss:$16 sps:$4 sm:$0xff]  }
  0x30   :  { %v920_v23 = vld [vmem:[#allocation5 + $0x48] ss:$16 sps:$4 sm:$0xff]   ;;  %v921_v24 = vld [vmem:[#allocation5 + $0x24] ss:$16 sps:$4 sm:$0xff]   ;;  %v923_v25 = vld [vmem:[#allocation5 + $0x2c] ss:$16 sps:$4 sm:$0xff]  }
  0x31   :  { %v925_v26 = vld [vmem:[#allocation5 + $0x20] ss:$16 sps:$4 sm:$0xff]   ;;  %v926_v27 = vld [vmem:[#allocation5 + $0x28] ss:$16 sps:$4 sm:$0xff]   ;;  %v927_v28 = vld [vmem:[#allocation5 + $0x4] ss:$16 sps:$4 sm:$0xff]  }
  0x32   :  { %469 = vmatpush1.bf16.msra.mxu0 %v901_v10  ;;  %522 = vmatpush1.bf16.msra.mxu1 %v902_v11  ;;  %v929_v29 = vld [vmem:[#allocation5 + $0xc] ss:$16 sps:$4 sm:$0xff]   ;;  %v931_v30 = vld [vmem:[#allocation5] ss:$16 sps:$4 sm:$0xff]   ;;  %v932_v31 = vld [vmem:[#allocation5 + $0x8] ss:$16 sps:$4 sm:$0xff]  }
  0x33   :  { %470 = vmatprep.subr.bf16.mxu0 %v903_v12  ;;  %523 = vmatprep.subr.bf16.mxu1 %v905_v13  ;;  %v933_v32 = vld [vmem:[#allocation5 + $0x1e4] ss:$16 sps:$4 sm:$0xff]   ;;  %v935_v33 = vld [vmem:[#allocation5 + $0x1ec] ss:$16 sps:$4 sm:$0xff]   ;;  %v937_v34 = vld [vmem:[#allocation5 + $0x1e0] ss:$16 sps:$4 sm:$0xff]  }
  0x34   :  { %v938_v35 = vld [vmem:[#allocation5 + $0x1e8] ss:$16 sps:$4 sm:$0xff]   ;;  %v939_v36 = vld [vmem:[#allocation5 + $0x1c4] ss:$16 sps:$4 sm:$0xff]   ;;  %v941_v37 = vld [vmem:[#allocation5 + $0x1cc] ss:$16 sps:$4 sm:$0xff]  }
  0x35   :  { %v943_v38 = vld [vmem:[#allocation5 + $0x1c0] ss:$16 sps:$4 sm:$0xff]   ;;  %v944_v39 = vld [vmem:[#allocation5 + $0x1c8] ss:$16 sps:$4 sm:$0xff]   ;;  %v945_v40 = vld [vmem:[#allocation5 + $0x1a4] ss:$16 sps:$4 sm:$0xff]  }
  0x36   :  { %471 = vmatpush1.bf16.msra.mxu0 %v907_v14  ;;  %524 = vmatpush1.bf16.msra.mxu1 %v908_v15  ;;  %v947_v41 = vld [vmem:[#allocation5 + $0x1ac] ss:$16 sps:$4 sm:$0xff]   ;;  %v949_v42 = vld [vmem:[#allocation5 + $0x1a0] ss:$16 sps:$4 sm:$0xff]   ;;  %v950_v43 = vld [vmem:[#allocation5 + $0x1a8] ss:$16 sps:$4 sm:$0xff]  }
  0x37   :  { %472 = vmatprep.subr.bf16.mxu0 %v909_v16  ;;  %525 = vmatprep.subr.bf16.mxu1 %v911_v17  ;;  %v951_v44 = vld [vmem:[#allocation5 + $0x184] ss:$16 sps:$4 sm:$0xff]   ;;  %v953_v45 = vld [vmem:[#allocation5 + $0x18c] ss:$16 sps:$4 sm:$0xff]   ;;  %v955_v46 = vld [vmem:[#allocation5 + $0x180] ss:$16 sps:$4 sm:$0xff]  }
  0x38   :  { %v983_v47 = vld [vmem:[#allocation2 + $0x4] ss:$8 sps:$4 sm:$0xff]   ;;  %v956_v48 = vld [vmem:[#allocation5 + $0x188] ss:$16 sps:$4 sm:$0xff]   ;;  %v961_v51 = vld [vmem:[#allocation5 + $0x160] ss:$16 sps:$4 sm:$0xff]  }
  0x39   :  { %v957_v49 = vld [vmem:[#allocation5 + $0x164] ss:$16 sps:$4 sm:$0xff]   ;;  %v959_v50 = vld [vmem:[#allocation5 + $0x16c] ss:$16 sps:$4 sm:$0xff]   ;;  %496 = vmatprep.mubr.bf16.mxu0 %v983_v47  ;;  %549 = vmatprep.mubr.bf16.mxu1 %v983_v47  ;;  %v962_v52 = vld [vmem:[#allocation5 + $0x168] ss:$16 sps:$4 sm:$0xff]  }
  0x3a   :  { %473 = vmatpush1.bf16.msra.mxu0 %v913_v18  ;;  %526 = vmatpush1.bf16.msra.mxu1 %v914_v19  ;;  %v963_v53 = vld [vmem:[#allocation5 + $0x144] ss:$16 sps:$4 sm:$0xff]   ;;  %v965_v54 = vld [vmem:[#allocation5 + $0x14c] ss:$16 sps:$4 sm:$0xff]   ;;  %v967_v55 = vld [vmem:[#allocation5 + $0x140] ss:$16 sps:$4 sm:$0xff]  }
  0x3b   :  { %474 = vmatprep.subr.bf16.mxu0 %v915_v20  ;;  %527 = vmatprep.subr.bf16.mxu1 %v917_v21  ;;  %v968_v56 = vld [vmem:[#allocation5 + $0x148] ss:$16 sps:$4 sm:$0xff]   ;;  %v969_v57 = vld [vmem:[#allocation5 + $0x124] ss:$16 sps:$4 sm:$0xff]   ;;  %v971_v58 = vld [vmem:[#allocation5 + $0x12c] ss:$16 sps:$4 sm:$0xff]  }
  0x3c   :  { %v973_v59 = vld [vmem:[#allocation5 + $0x120] ss:$16 sps:$4 sm:$0xff]   ;;  %v974_v60 = vld [vmem:[#allocation5 + $0x128] ss:$16 sps:$4 sm:$0xff]   ;;  %v975_v61 = vld [vmem:[#allocation5 + $0x104] ss:$16 sps:$4 sm:$0xff]  }
  0x3d   :  { %v977_v62 = vld [vmem:[#allocation5 + $0x10c] ss:$16 sps:$4 sm:$0xff]   ;;  %v979_v63 = vld [vmem:[#allocation5 + $0x100] ss:$16 sps:$4 sm:$0xff]   ;;  %v980_v0 = vld [vmem:[#allocation5 + $0x108] ss:$16 sps:$4 sm:$0xff]  }
  0x3e   :  { %475 = vmatpush1.bf16.msra.mxu0 %v919_v22  ;;  %528 = vmatpush1.bf16.msra.mxu1 %v920_v23  ;;  %v625_v1 = vld [vmem:[#allocation7 + $0xf8] sm:$0xff]  ;;  %v981_v2 = vld [vmem:[#allocation2] ss:$8 sps:$4 sm:$0xff]   ;;  %v624_v5 = vld [vmem:[#allocation7 + $0xf0] sm:$0xff]  ;;  %s1080_s0 = smov [#allocation8]  }
  0x3f   :  { %476 = vmatprep.subr.bf16.mxu0 %v921_v24  ;;  %529 = vmatprep.subr.bf16.mxu1 %v923_v25  ;;  %v984_v3 = vld [vmem:[#allocation2 + $0x14] ss:$8 sps:$4 sm:$0xff]   ;;  %v623_v7 = vld [vmem:[#allocation7 + $0xe8] sm:$0xff]  ;;  %v986_v9 = vld [vmem:[#allocation2 + $0x10] ss:$8 sps:$4 sm:$0xff]   ;;  %s720_s2 = sshll.u32 %s1080_s0, 4  ;;  %s721_s2 = int_to_ptr.vmem [resolvable:$true] %s720_s2 }
  0x40   :  { %v609_v4 = vld [vmem:[#allocation7 + $0x78] sm:$0xff]  ;;  %v608_v6 = vld [vmem:[#allocation7 + $0x70] sm:$0xff]  ;;  %v607_v8 = vld [vmem:[#allocation7 + $0x68] sm:$0xff]  ;;  %s1047_s30 = scalar_lea.vmem %s721_s2, 512  ;;  %p1052_p2 = scmp.lt.s32.totalorder %s721_s2, %s721_s2 }
  0x41   :  { %v622_v10 = vld [vmem:[#allocation7 + $0xe0] sm:$0xff]  ;;  %v621_v12 = vld [vmem:[#allocation7 + $0xd8] sm:$0xff]  ;;  %v620_v14 = vld [vmem:[#allocation7 + $0xd0] sm:$0xff]  ;;  %p1048_p1 = scmp.ne.s32.totalorder %s721_s2, %s1047_s30  ;;  %p1053_p3 = scmp.lt.s32.totalorder %s1047_s30, %s1047_s30 }
  0x42   :  { %477 = vmatpush1.bf16.msra.mxu0 %v925_v26  ;;  %530 = vmatpush1.bf16.msra.mxu1 %v926_v27  ;;  %v606_v11 = vld [vmem:[#allocation7 + $0x60] sm:$0xff]  ;;  %v605_v13 = vld [vmem:[#allocation7 + $0x58] sm:$0xff]  ;;  %v604_v15 = vld [vmem:[#allocation7 + $0x50] sm:$0xff] }
  0x43   :  { %478 = vmatprep.subr.bf16.mxu0 %v927_v28  ;;  %531 = vmatprep.subr.bf16.mxu1 %v929_v29  ;;  %v619_v16 = vld [vmem:[#allocation7 + $0xc8] sm:$0xff]  ;;  %v618_v18 = vld [vmem:[#allocation7 + $0xc0] sm:$0xff]  ;;  %v617_v20 = vld [vmem:[#allocation7 + $0xb8] sm:$0xff]  ;;  %p1054_p4 = por %p1053_p3, %p1052_p2 }
  0x44   :  { %v603_v17 = vld [vmem:[#allocation7 + $0x48] sm:$0xff]  ;;  %v602_v19 = vld [vmem:[#allocation7 + $0x40] sm:$0xff]  ;;  %v601_v21 = vld [vmem:[#allocation7 + $0x38] sm:$0xff] }
  0x45   :  { %v616_v22 = vld [vmem:[#allocation7 + $0xb0] sm:$0xff]  ;;  %v615_v24 = vld [vmem:[#allocation7 + $0xa8] sm:$0xff]  ;;  %v614_v26 = vld [vmem:[#allocation7 + $0xa0] sm:$0xff]  ;;  %p1055_p5 = pnand %p1054_p4, %p1048_p1 }
  0x46   :  { %479 = vmatpush1.bf16.msra.mxu0 %v931_v30  ;;  %532 = vmatpush1.bf16.msra.mxu1 %v932_v31  ;;  %v600_v23 = vld [vmem:[#allocation7 + $0x30] sm:$0xff]  ;;  %v599_v25 = vld [vmem:[#allocation7 + $0x28] sm:$0xff]  ;;  %v598_v27 = vld [vmem:[#allocation7 + $0x20] sm:$0xff] }
  0x47   :  { %480 = vmatprep.subr.bf16.mxu0 %v933_v32  ;;  %533 = vmatprep.subr.bf16.mxu1 %v935_v33  ;;  %v613_v28 = vld [vmem:[#allocation7 + $0x98] sm:$0xff]  ;;  %v612_v30 = vld [vmem:[#allocation7 + $0x90] sm:$0xff]  ;;  %v611_v32 = vld [vmem:[#allocation7 + $0x88] sm:$0xff] }
  0x48   :  { %v597_v29 = vld [vmem:[#allocation7 + $0x18] sm:$0xff]  ;;  %v596_v31 = vld [vmem:[#allocation7 + $0x10] sm:$0xff]  ;;  %v595_v33 = vld [vmem:[#allocation7 + $0x8] sm:$0xff] }
  0x4a   :  { %481 = vmatpush2.bf16.msra.mxu0 %v937_v34  ;;  %534 = vmatpush2.bf16.msra.mxu1 %v938_v35  ;;  %v610_v34 = vld [vmem:[#allocation7 + $0x80] sm:$0xff] }
  0x4b   :  { %482 = vmatprep.subr.bf16.mxu0 %v939_v36  ;;  %535 = vmatprep.subr.bf16.mxu1 %v941_v37  ;;  %v594_v35 = vld [vmem:[#allocation7] sm:$0xff] }
  0x4e   :  { %483 = vmatpush2.bf16.msra.mxu0 %v943_v38  ;;  %536 = vmatpush2.bf16.msra.mxu1 %v944_v39 }
  0x4f   :  { %484 = vmatprep.subr.bf16.mxu0 %v945_v40  ;;  %537 = vmatprep.subr.bf16.mxu1 %v947_v41 }
  0x52   :  { %485 = vmatpush2.bf16.msra.mxu0 %v949_v42  ;;  %538 = vmatpush2.bf16.msra.mxu1 %v950_v43 }
  0x53   :  { %486 = vmatprep.subr.bf16.mxu0 %v951_v44  ;;  %539 = vmatprep.subr.bf16.mxu1 %v953_v45 }
  0x56   :  { %487 = vmatpush2.bf16.msra.mxu0 %v955_v46  ;;  %540 = vmatpush2.bf16.msra.mxu1 %v956_v48 }
  0x57   :  { %488 = vmatprep.subr.bf16.mxu0 %v957_v49  ;;  %541 = vmatprep.subr.bf16.mxu1 %v959_v50 }
  0x5a   :  { %489 = vmatpush2.bf16.msra.mxu0 %v961_v51  ;;  %542 = vmatpush2.bf16.msra.mxu1 %v962_v52 }
  0x5b   :  { %490 = vmatprep.subr.bf16.mxu0 %v963_v53  ;;  %543 = vmatprep.subr.bf16.mxu1 %v965_v54 }
  0x5e   :  { %491 = vmatpush2.bf16.msra.mxu0 %v967_v55  ;;  %544 = vmatpush2.bf16.msra.mxu1 %v968_v56 }
  0x5f   :  { %492 = vmatprep.subr.bf16.mxu0 %v969_v57  ;;  %545 = vmatprep.subr.bf16.mxu1 %v971_v58 }
  0x62   :  { %493 = vmatpush2.bf16.msra.mxu0 %v973_v59  ;;  %546 = vmatpush2.bf16.msra.mxu1 %v974_v60 }
  0x63   :  { %494 = vmatprep.subr.bf16.mxu0 %v975_v61  ;;  %547 = vmatprep.subr.bf16.mxu1 %v977_v62 }
  0x66   :  { %495 = vmatpush2.bf16.msra.mxu0 %v979_v63  ;;  %548 = vmatpush2.bf16.msra.mxu1 %v980_v0 }
  0x67   :  { %801 = vmatprep.subr.mxu0 %v625_v1  ;;  %845 = vmatprep.subr.mxu1 %v625_v1 }
  0x69   :  { %497 = vmatmul.mubr.bf16.vlgmr.msra.gmra.mxu0 %v981_v2  ;;  %550 = vmatmul.mubr.bf16.vlgmr.msra.gmra.mxu1 %v981_v2 }
  0x6a   :  { %506 = vmatprep.mubr.bf16.mxu0 %v984_v3  ;;  %559 = vmatprep.mubr.bf16.mxu1 %v984_v3 }
  0x6b   :  { %802 = vmatpush3.msra.mxu0 %v609_v4  ;;  %861 = vmatpush3.msra.mxu1 %v609_v4 }
  0x6c   :  { %803 = vmatprep.subr.mxu0 %v624_v5  ;;  %846 = vmatprep.subr.mxu1 %v624_v5 }
  0x6d   :  { %804 = vmatpush3.msra.mxu0 %v608_v6  ;;  %862 = vmatpush3.msra.mxu1 %v608_v6 }
  0x6e   :  { %805 = vmatprep.subr.mxu0 %v623_v7  ;;  %847 = vmatprep.subr.mxu1 %v623_v7 }
  0x6f   :  { %806 = vmatpush3.msra.mxu0 %v607_v8  ;;  %863 = vmatpush3.msra.mxu1 %v607_v8 }
  0x70   :  { %807 = vmatprep.subr.mxu0 %v622_v10  ;;  %848 = vmatprep.subr.mxu1 %v622_v10 }
  0x71   :  { %507 = vmatmul.mubr.bf16.gmra.mxu0 %v986_v9  ;;  %560 = vmatmul.mubr.bf16.gmra.mxu1 %v986_v9 }
  0x72   :  { %808 = vmatpush3.msra.mxu0 %v606_v11  ;;  %864 = vmatpush3.msra.mxu1 %v606_v11 }
  0x73   :  { %809 = vmatprep.subr.mxu0 %v621_v12  ;;  %849 = vmatprep.subr.mxu1 %v621_v12 }
  0x74   :  { %810 = vmatpush3.msra.mxu0 %v605_v13  ;;  %865 = vmatpush3.msra.mxu1 %v605_v13 }
  0x75   :  { %811 = vmatprep.subr.mxu0 %v620_v14  ;;  %850 = vmatprep.subr.mxu1 %v620_v14 }
  0x76   :  { %812 = vmatpush3.msra.mxu0 %v604_v15  ;;  %866 = vmatpush3.msra.mxu1 %v604_v15 }
  0x77   :  { %813 = vmatprep.subr.mxu0 %v619_v16  ;;  %851 = vmatprep.subr.mxu1 %v619_v16 }
  0x78   :  { %814 = vmatpush3.msra.mxu0 %v603_v17  ;;  %867 = vmatpush3.msra.mxu1 %v603_v17 }
  0x79   :  { %815 = vmatprep.subr.mxu0 %v618_v18  ;;  %852 = vmatprep.subr.mxu1 %v618_v18 }
  0x7a   :  { %816 = vmatpush3.msra.mxu0 %v602_v19  ;;  %868 = vmatpush3.msra.mxu1 %v602_v19 }
  0x7b   :  { %817 = vmatprep.subr.mxu0 %v617_v20  ;;  %853 = vmatprep.subr.mxu1 %v617_v20 }
  0x7c   :  { %818 = vmatpush3.msra.mxu0 %v601_v21  ;;  %869 = vmatpush3.msra.mxu1 %v601_v21 }
  0x7d   :  { %819 = vmatprep.subr.mxu0 %v616_v22  ;;  %854 = vmatprep.subr.mxu1 %v616_v22 }
  0x7e   :  { %820 = vmatpush3.msra.mxu0 %v600_v23  ;;  %870 = vmatpush3.msra.mxu1 %v600_v23 }
  0x7f   :  { %821 = vmatprep.subr.mxu0 %v615_v24  ;;  %855 = vmatprep.subr.mxu1 %v615_v24 }
  0x80   :  { %822 = vmatpush3.msra.mxu0 %v599_v25  ;;  %871 = vmatpush3.msra.mxu1 %v599_v25 }
  0x81   :  { %823 = vmatprep.subr.mxu0 %v614_v26  ;;  %856 = vmatprep.subr.mxu1 %v614_v26 }
  0x82   :  { %824 = vmatpush3.msra.mxu0 %v598_v27  ;;  %872 = vmatpush3.msra.mxu1 %v598_v27 }
  0x83   :  { %825 = vmatprep.subr.mxu0 %v613_v28  ;;  %857 = vmatprep.subr.mxu1 %v613_v28 }
  0x84   :  { %826 = vmatpush3.msra.mxu0 %v597_v29  ;;  %873 = vmatpush3.msra.mxu1 %v597_v29 }
  0x85   :  { %827 = vmatprep.subr.mxu0 %v612_v30  ;;  %858 = vmatprep.subr.mxu1 %v612_v30 }
  0x86   :  { %828 = vmatpush3.msra.mxu0 %v596_v31  ;;  %874 = vmatpush3.msra.mxu1 %v596_v31 }
  0x87   :  { %829 = vmatprep.subr.mxu0 %v611_v32  ;;  %859 = vmatprep.subr.mxu1 %v611_v32 }
  0x88   :  { %830 = vmatpush3.msra.mxu0 %v595_v33  ;;  %875 = vmatpush3.msra.mxu1 %v595_v33 }
  0x89   :  { %831 = vmatprep.subr.mxu0 %v610_v34  ;;  %860 = vmatprep.subr.mxu1 %v610_v34 }
  0x8a   :  { %832 = vmatpush3.msra.mxu0 %v594_v35  ;;  %876 = vmatpush3.msra.mxu1 %v594_v35 }
 0x129   :  { %v498_v36 = vpop.f32.mrf.mxu0  ;;  %v551_v37 = vpop.f32.mrf.mxu1 }
 0x12a   :  { %v570_v38 = vmul.f32 %v498_v36, %v498_v36  ;;  %v578_v39 = vmul.f32 %v551_v37, %v551_v37 }
 0x12b   :  { %v500_v40 = vpop.f32.mrf.mxu0  ;;  %v553_v41 = vpop.f32.mrf.mxu1 }
 0x12c   :  { %v571_v42 = vmul.f32 %v500_v40, %v500_v40  ;;  %v579_v43 = vmul.f32 %v553_v41, %v553_v41  ;;  %v586_v47 = vadd.f32 %v578_v39, %v570_v38 }
 0x12d   :  { %v502_v44 = vpop.f32.mrf.mxu0  ;;  %v555_v45 = vpop.f32.mrf.mxu1 }
 0x12e   :  { %v587_v46 = vadd.f32 %v579_v43, %v571_v42  ;;  %v572_v48 = vmul.f32 %v502_v44, %v502_v44  ;;  %v580_v49 = vmul.f32 %v555_v45, %v555_v45 }
 0x12f   :  { %v504_v50 = vpop.f32.mrf.mxu0  ;;  %v557_v51 = vpop.f32.mrf.mxu1 }
 0x130   :  { %v573_v52 = vmul.f32 %v504_v50, %v504_v50  ;;  %v581_v53 = vmul.f32 %v557_v51, %v557_v51  ;;  %690 = vmatprep.mubr.f32.mxu0 %v587_v46  ;;  %v588_v57 = vadd.f32 %v580_v49, %v572_v48 }
 0x131   :  { %v508_v54 = vpop.f32.mrf.mxu0  ;;  %v561_v55 = vpop.f32.mrf.mxu1  ;;  %691 = vmatmul.mubr.f32.vlgmr.msra.gmra.mxu0 %v586_v47 }
 0x132   :  { %v589_v56 = vadd.f32 %v581_v53, %v573_v52  ;;  %v574_v58 = vmul.f32 %v508_v54, %v508_v54  ;;  %v582_v59 = vmul.f32 %v561_v55, %v561_v55 }
 0x133   :  { %v510_v60 = vpop.f32.mrf.mxu0  ;;  %v563_v61 = vpop.f32.mrf.mxu1 }
 0x134   :  { %v575_v62 = vmul.f32 %v510_v60, %v510_v60  ;;  %v583_v63 = vmul.f32 %v563_v61, %v563_v61  ;;  %695 = vmatprep.mubr.f32.mxu0 %v589_v56  ;;  %v590_v3 = vadd.f32 %v582_v59, %v574_v58 }
 0x135   :  { %v512_v0 = vpop.f32.mrf.mxu0  ;;  %v565_v1 = vpop.f32.mrf.mxu1  ;;  %696 = vmatmul.mubr.f32.gmra.mxu0 %v588_v57 }
 0x136   :  { %v591_v2 = vadd.f32 %v583_v63, %v575_v62  ;;  %v576_v4 = vmul.f32 %v512_v0, %v512_v0  ;;  %v584_v5 = vmul.f32 %v565_v1, %v565_v1 }
 0x137   :  { %v514_v6 = vpop.f32.mrf.mxu0  ;;  %v567_v7 = vpop.f32.mrf.mxu1 }
 0x138   :  { %v577_v8 = vmul.f32 %v514_v6, %v514_v6  ;;  %v585_v9 = vmul.f32 %v567_v7, %v567_v7  ;;  %700 = vmatprep.mubr.f32.mxu1 %v591_v2  ;;  %v592_v11 = vadd.f32 %v584_v5, %v576_v4 }
 0x139   :  { %701 = vmatmul.mubr.f32.vlgmr.msra.gmra.mxu1 %v590_v3 }
 0x13a   :  { %v593_v10 = vadd.f32 %v585_v9, %v577_v8 }
 0x13c   :  { %705 = vmatprep.mubr.f32.mxu1 %v593_v10 }
 0x13d   :  { %706 = vmatmul.mubr.f32.gmra.mxu1 %v592_v11 }
 0x1f1   :  { %v833_v12 = vpop.f32.mrf.mxu0 }
 0x1f3   :  { %v834_v13 = vpop.f32.mrf.mxu0 }
 0x1f4   :  { %v835_v14 = vadd.f32 %v834_v13, %v833_v12 }
 0x1f5   :  { %v836_v15 = vpop.f32.mrf.mxu0 }
 0x1f6   :  { %711 = vst [vmem:[#allocation8] sm:$0xff] %v835_v14 }
 0x1f7   :  { %v837_v16 = vpop.f32.mrf.mxu0 }
 0x1f8   :  { %v838_v17 = vadd.f32 %v837_v16, %v836_v15 }
 0x1f9   :  { %v839_v18 = vpop.f32.mrf.mxu1 }
 0x1fa   :  { %712 = vst [vmem:[#allocation8 + $0x8] sm:$0xff] %v838_v17 }
 0x1fb   :  { %v840_v19 = vpop.f32.mrf.mxu1 }
 0x1fc   :  { %v841_v20 = vadd.f32 %v840_v19, %v839_v18 }
 0x1fd   :  { %v842_v21 = vpop.f32.mrf.mxu1 }
 0x1fe   :  { %713 = vst [vmem:[#allocation8 + $0x10] sm:$0xff] %v841_v20 }
 0x1ff   :  { %v843_v22 = vpop.f32.mrf.mxu1 }
 0x200   :  { %v844_v23 = vadd.f32 %v843_v22, %v842_v21 }
 0x202   :  { %714 = vst [vmem:[#allocation8 + $0x18] sm:$0xff] %v844_v23 }
 0x203   :  { %1058 = shalt.err (!%p1055_p5)
}
 0x204   :  { %726 = dma.vmem_to_hbm [thread:$0]  %s721_s2, 512, %s1125_s3, [#allocation4], %s1077_s22, %s1077_s22, %s1078_s23  }
 0x205   :  { %1071 = dma.done.wait [#allocation4], 512  }
 0x206   :  { %1072 = vsyncadd [#allocation4], 4294966784 }
 0x207   :  { %730 = vsyncpa [#allocation3], 1 }
 0x208   :  { %731 = vsyncpa [#allocation6], 1 }
 0x209   :  { %732 = vsyncpa [#allocation4], 1 }

</bundles_post_ra>
